<compile_context>
chip_gen: v7x
topology: tpu7x:2x2x1
jax: 0.10.0
libtpu: 0.0.40
codegen_flags: <defaults>
</compile_context>

<pallas_src>
import math

import jax
import jax.numpy as jnp
from jax import lax
from jax.experimental import pallas as pl
from jax.experimental.pallas import tpu as pltpu


def embedding_layer_forward(x, offsets, emb_table, *, target_rows_per_step=512):
    """x: (batch, num_fields) int32, offsets: (num_fields,) int32,
    emb_table: (sum(field_dims), embed_dim) float32
    returns: (batch, num_fields, embed_dim) float32 == emb_table[x + offsets]"""
    batch, num_fields = x.shape
    vocab, embed_dim = emb_table.shape
    itemsize = jnp.dtype(emb_table.dtype).itemsize

    # ---- layout padding: lane-dense last dim (mult of 128), sublane-aligned rows ----
    e_pad = pl.cdiv(embed_dim, 128) * 128
    v_pad = pl.cdiv(vocab, 8) * 8
    table = emb_table
    if (v_pad, e_pad) != (vocab, embed_dim):
        table = jnp.zeros((v_pad, e_pad), emb_table.dtype)
        table = table.at[:vocab, :embed_dim].set(emb_table)

    # ---- batch tiling: one grid step gathers tb * num_fields rows ----
    # tb*num_fields must be a multiple of 8 (sublane constraint on the output block).
    tb_min = 8 // math.gcd(num_fields, 8)
    tb = tb_min * max(1, target_rows_per_step // (tb_min * num_fields))
    tb = min(tb, pl.cdiv(batch, tb_min) * tb_min)
    batch_pad = pl.cdiv(batch, tb) * tb
    rows_per_step = tb * num_fields
    grid = (batch_pad // tb,)

    # ---- flat row indices, precomputed (and clamped: Pallas has no OOB check) ----
    flat_idx = (x.astype(jnp.int32) + offsets.astype(jnp.int32)[None, :]).reshape(-1)
    flat_idx = jnp.clip(flat_idx, 0, vocab - 1)
    if batch_pad != batch:
        pad = batch_pad * num_fields - flat_idx.shape[0]
        flat_idx = jnp.concatenate([flat_idx, jnp.zeros((pad,), jnp.int32)])

    # ---- VMEM residency gate (v7x: 64 MiB physical; v5e/v6e: 128 MiB) ----
    try:
        vmem_cap = int(pltpu.get_tpu_info().vmem_capacity_bytes)
    except Exception:
        vmem_cap = 64 << 20  # conservative (v7x)
    table_bytes = v_pad * e_pad * itemsize
    out_block_bytes = rows_per_step * e_pad * itemsize
    needed = 2 * table_bytes + 2 * out_block_bytes + (2 << 20)
    if needed > vmem_cap:
        # TODO(synk): chunked manual-DMA gather path (memory_space=pl.ANY +
        # pltpu.make_async_copy, >=8 rows per copy, double-buffered) for tables
        # too large to keep resident in VMEM.
        raise NotImplementedError(
            "embedding table too large for the VMEM-resident gather path")
    vmem_limit = int(min(vmem_cap, max(needed, 32 << 20)))

    unroll = min(rows_per_step, 8)

    def kernel(idx_ref, table_ref, out_ref):
        # idx_ref: SMEM (batch_pad*num_fields,) int32 flat row ids
        # table_ref: VMEM (v_pad, e_pad) resident table (constant index_map)
        # out_ref:  VMEM (rows_per_step, e_pad) lane-dense output block
        base = pl.program_id(0) * rows_per_step

        def body(r, carry):
            row_id = idx_ref[base + r]                       # scalar SMEM read
            out_ref[pl.ds(r, 1), :] = table_ref[pl.ds(row_id, 1), :]
            return carry

        lax.fori_loop(0, rows_per_step, body, 0, unroll=unroll)

    out = pl.pallas_call(
        kernel,
        out_shape=jax.ShapeDtypeStruct((batch_pad * num_fields, e_pad),
                                       emb_table.dtype),
        grid_spec=pltpu.PrefetchScalarGridSpec(
            num_scalar_prefetch=1,
            grid=grid,
            in_specs=[pl.BlockSpec((v_pad, e_pad), lambda i, idx: (0, 0))],
            out_specs=pl.BlockSpec((rows_per_step, e_pad), lambda i, idx: (i, 0)),
        ),
        compiler_params=pltpu.CompilerParams(
            dimension_semantics=("parallel",),
            vmem_limit_bytes=vmem_limit),
    )(flat_idx, table)

    return out.reshape(batch_pad, num_fields, e_pad)[:batch, :, :embed_dim]


if __name__ == "__main__":
    # Small shapes consistent with the module.
    field_dims = (3, 5, 7, 4)
    embed_dim = 32
    batch = 2
    num_fields = len(field_dims)
    vocab = sum(field_dims)

    key = jax.random.PRNGKey(0)
    k_emb, k_x = jax.random.split(key)

    # torch.nn.init.xavier_uniform_ on a (vocab, embed_dim) weight:
    bound = (6.0 / (vocab + embed_dim)) ** 0.5
    emb_table = jax.random.uniform(
        k_emb, (vocab, embed_dim), dtype=jnp.float32, minval=-bound, maxval=bound)

    # offsets = (0, *cumsum(field_dims)[:-1])
    offs = [0]
    for d in field_dims[:-1]:
        offs.append(offs[-1] + d)
    offsets = jnp.array(offs, dtype=jnp.int32)

    # Random indices, each field's index in [0, field_dims[f]).
    maxes = jnp.array(field_dims, dtype=jnp.float32)
    u = jax.random.uniform(k_x, (batch, num_fields))
    x = jnp.minimum((u * maxes).astype(jnp.int32),
                    jnp.array(field_dims, dtype=jnp.int32) - 1)

    out = embedding_layer_forward(x, offsets, emb_table)
    out = jax.block_until_ready(out)

    # Pure-JAX reference of the PyTorch forward.
    ref = emb_table[x + offsets[None, :]]
    assert out.shape == (batch, num_fields, embed_dim)
    assert jnp.array_equal(out, ref), "mismatch vs reference gather"

    print("KERNEL_OK")
</pallas_src>

<mosaic_0001>
module attributes {stable_mosaic.version = 11 : i64} {
  func.func @kernel(%arg0: i32, %arg1: memref<8xi32, #tpu.memory_space<smem>>, %arg2: memref<24x128xf32, #tpu.memory_space<vmem>>, %arg3: memref<8x128xf32, #tpu.memory_space<vmem>>) attributes {dimension_semantics = [#tpu.dimension_semantics<parallel>], iteration_bounds = array<i64: 1>, scalar_prefetch = 1 : i64, scratch_operands = 0 : i64, tpu.core_type = #tpu.core_type<tc>, window_params = [{pipeline_mode = #tpu.pipeline_mode<synchronous>, transform_indices = @transform_0, window_bounds = array<i64: 24, 128>}, {transform_indices = @transform_1, window_bounds = array<i64: 8, 128>}]} {
    %c8_i32 = arith.constant 8 : i32
    %0 = arith.muli %arg0, %c8_i32 : i32
    %c0_i32 = arith.constant 0 : i32
    %1 = arith.addi %0, %c0_i32 : i32
    %2 = arith.index_cast %1 : i32 to index
    %3 = memref.load %arg1[%2] : memref<8xi32, #tpu.memory_space<smem>>
    %4 = arith.index_cast %3 : i32 to index
    %c0 = arith.constant 0 : index
    %5 = vector.load %arg2[%4, %c0] : memref<24x128xf32, #tpu.memory_space<vmem>>, vector<1x128xf32>
    %6 = arith.index_cast %c0_i32 : i32 to index
    %c0_0 = arith.constant 0 : index
    %7 = vector.load %arg3[%6, %c0_0] : memref<8x128xf32, #tpu.memory_space<vmem>>, vector<1x128xf32>
    tpu.vector_store %arg3[%6, %c0_0], %5 {strides = array<i32>} : memref<8x128xf32, #tpu.memory_space<vmem>>, vector<1x128xf32>,
    %c1_i32 = arith.constant 1 : i32
    %8 = arith.addi %0, %c1_i32 : i32
    %9 = arith.index_cast %8 : i32 to index
    %10 = memref.load %arg1[%9] : memref<8xi32, #tpu.memory_space<smem>>
    %11 = arith.index_cast %10 : i32 to index
    %c0_1 = arith.constant 0 : index
    %12 = vector.load %arg2[%11, %c0_1] : memref<24x128xf32, #tpu.memory_space<vmem>>, vector<1x128xf32>
    %13 = arith.index_cast %c1_i32 : i32 to index
    %c0_2 = arith.constant 0 : index
    %14 = vector.load %arg3[%13, %c0_2] : memref<8x128xf32, #tpu.memory_space<vmem>>, vector<1x128xf32>
    tpu.vector_store %arg3[%13, %c0_2], %12 {strides = array<i32>} : memref<8x128xf32, #tpu.memory_space<vmem>>, vector<1x128xf32>,
    %c2_i32 = arith.constant 2 : i32
    %15 = arith.addi %0, %c2_i32 : i32
    %16 = arith.index_cast %15 : i32 to index
    %17 = memref.load %arg1[%16] : memref<8xi32, #tpu.memory_space<smem>>
    %18 = arith.index_cast %17 : i32 to index
    %c0_3 = arith.constant 0 : index
    %19 = vector.load %arg2[%18, %c0_3] : memref<24x128xf32, #tpu.memory_space<vmem>>, vector<1x128xf32>
    %20 = arith.index_cast %c2_i32 : i32 to index
    %c0_4 = arith.constant 0 : index
    %21 = vector.load %arg3[%20, %c0_4] : memref<8x128xf32, #tpu.memory_space<vmem>>, vector<1x128xf32>
    tpu.vector_store %arg3[%20, %c0_4], %19 {strides = array<i32>} : memref<8x128xf32, #tpu.memory_space<vmem>>, vector<1x128xf32>,
    %c3_i32 = arith.constant 3 : i32
    %22 = arith.addi %0, %c3_i32 : i32
    %23 = arith.index_cast %22 : i32 to index
    %24 = memref.load %arg1[%23] : memref<8xi32, #tpu.memory_space<smem>>
    %25 = arith.index_cast %24 : i32 to index
    %c0_5 = arith.constant 0 : index
    %26 = vector.load %arg2[%25, %c0_5] : memref<24x128xf32, #tpu.memory_space<vmem>>, vector<1x128xf32>
    %27 = arith.index_cast %c3_i32 : i32 to index
    %c0_6 = arith.constant 0 : index
    %28 = vector.load %arg3[%27, %c0_6] : memref<8x128xf32, #tpu.memory_space<vmem>>, vector<1x128xf32>
    tpu.vector_store %arg3[%27, %c0_6], %26 {strides = array<i32>} : memref<8x128xf32, #tpu.memory_space<vmem>>, vector<1x128xf32>,
    %c4_i32 = arith.constant 4 : i32
    %29 = arith.addi %0, %c4_i32 : i32
    %30 = arith.index_cast %29 : i32 to index
    %31 = memref.load %arg1[%30] : memref<8xi32, #tpu.memory_space<smem>>
    %32 = arith.index_cast %31 : i32 to index
    %c0_7 = arith.constant 0 : index
    %33 = vector.load %arg2[%32, %c0_7] : memref<24x128xf32, #tpu.memory_space<vmem>>, vector<1x128xf32>
    %34 = arith.index_cast %c4_i32 : i32 to index
    %c0_8 = arith.constant 0 : index
    %35 = vector.load %arg3[%34, %c0_8] : memref<8x128xf32, #tpu.memory_space<vmem>>, vector<1x128xf32>
    tpu.vector_store %arg3[%34, %c0_8], %33 {strides = array<i32>} : memref<8x128xf32, #tpu.memory_space<vmem>>, vector<1x128xf32>,
    %c5_i32 = arith.constant 5 : i32
    %36 = arith.addi %0, %c5_i32 : i32
    %37 = arith.index_cast %36 : i32 to index
    %38 = memref.load %arg1[%37] : memref<8xi32, #tpu.memory_space<smem>>
    %39 = arith.index_cast %38 : i32 to index
    %c0_9 = arith.constant 0 : index
    %40 = vector.load %arg2[%39, %c0_9] : memref<24x128xf32, #tpu.memory_space<vmem>>, vector<1x128xf32>
    %41 = arith.index_cast %c5_i32 : i32 to index
    %c0_10 = arith.constant 0 : index
    %42 = vector.load %arg3[%41, %c0_10] : memref<8x128xf32, #tpu.memory_space<vmem>>, vector<1x128xf32>
    tpu.vector_store %arg3[%41, %c0_10], %40 {strides = array<i32>} : memref<8x128xf32, #tpu.memory_space<vmem>>, vector<1x128xf32>,
    %c6_i32 = arith.constant 6 : i32
    %43 = arith.addi %0, %c6_i32 : i32
    %44 = arith.index_cast %43 : i32 to index
    %45 = memref.load %arg1[%44] : memref<8xi32, #tpu.memory_space<smem>>
    %46 = arith.index_cast %45 : i32 to index
    %c0_11 = arith.constant 0 : index
    %47 = vector.load %arg2[%46, %c0_11] : memref<24x128xf32, #tpu.memory_space<vmem>>, vector<1x128xf32>
    %48 = arith.index_cast %c6_i32 : i32 to index
    %c0_12 = arith.constant 0 : index
    %49 = vector.load %arg3[%48, %c0_12] : memref<8x128xf32, #tpu.memory_space<vmem>>, vector<1x128xf32>
    tpu.vector_store %arg3[%48, %c0_12], %47 {strides = array<i32>} : memref<8x128xf32, #tpu.memory_space<vmem>>, vector<1x128xf32>,
    %c7_i32 = arith.constant 7 : i32
    %50 = arith.addi %0, %c7_i32 : i32
    %51 = arith.index_cast %50 : i32 to index
    %52 = memref.load %arg1[%51] : memref<8xi32, #tpu.memory_space<smem>>
    %53 = arith.index_cast %52 : i32 to index
    %c0_13 = arith.constant 0 : index
    %54 = vector.load %arg2[%53, %c0_13] : memref<24x128xf32, #tpu.memory_space<vmem>>, vector<1x128xf32>
    %55 = arith.index_cast %c7_i32 : i32 to index
    %c0_14 = arith.constant 0 : index
    %56 = vector.load %arg3[%55, %c0_14] : memref<8x128xf32, #tpu.memory_space<vmem>>, vector<1x128xf32>
    tpu.vector_store %arg3[%55, %c0_14], %54 {strides = array<i32>} : memref<8x128xf32, #tpu.memory_space<vmem>>, vector<1x128xf32>,
    %c8_i32_15 = arith.constant 8 : i32
    return
  }
  func.func @transform_0(%arg0: i32, %arg1: memref<8xi32, #tpu.memory_space<smem>>) -> (i32, i32) {
    %c0_i32 = arith.constant 0 : i32
    %c0_i32_0 = arith.constant 0 : i32
    %c0_i32_1 = arith.constant 0 : i32
    return %c0_i32, %c0_i32_0 : i32, i32
  }
  func.func @transform_1(%arg0: i32, %arg1: memref<8xi32, #tpu.memory_space<smem>>) -> (i32, i32) {
    %c0_i32 = arith.constant 0 : i32
    %c0_i32_0 = arith.constant 0 : i32
    return %arg0, %c0_i32 : i32, i32
  }
}

</mosaic_0001>

<bundles_post_ra>
// kernel: tpu_custom_call.1
= control target key start
LH: loop header
LB: loop body
LE: loop exit
PB: predicated region body
PF: predicated region fallthrough
CT: control target
= control target key end

     0   :  { %s226_s0 = inlined_call_operand.hbm [shape: s32[8], index: 0, kind: input, shape index: {}]   ;;  %s227_s1 = inlined_call_operand.hbm [shape: f32[24,128], index: 1, kind: input, shape index: {}]   ;;  %s228_s2 = inlined_call_operand.hbm [shape: f32[8,128], index: 2, kind: output, shape index: {}]  }
   0x1   :  { %s103_s11 = scalar_lea.hbm %s226_s0, 16 }
   0x2   :  { %p104_p0 = scmp.ne.s32.totalorder %s226_s0, %s103_s11  ;;  %p107_p1 = scmp.lt.u32.totalorder %s103_s11, %s226_s0 }
   0x4   :  { %p109_p2 = pnand %p107_p1, %p104_p0 }
   0x6   :  { %112 = shalt.err (!%p109_p2)  }
   0x7   :  { %s163_s16 = smov [#allocation3]  }
   0x8   :  { %8 = dma.hbm_to_smem %s226_s0, 16, %s163_s16, [#allocation2] }
   0x9   :  { %157 = dma.done.wait [#allocation2], 16 }
   0xa   :  { %158 = vsyncadd [#allocation2], 4294967280 }
   0xb   :  { %10 = sfence }
   0xc   :  { %11 = vsyncpa [#allocation5], 0 }
   0xd   :  { %12 = vsyncpa [#allocation6], 0  ;;  %s164_s19 = smov [#allocation4]   ;;  %s113_s23 = scalar_lea.hbm %s227_s1, 384 }
   0xe   :  { %s18_s20 = sshll.u32 %s164_s19, 4  ;;  %p114_p3 = scmp.ne.s32.totalorder %s227_s1, %s113_s23  ;;  %s19_s20 = int_to_ptr.vmem [resolvable:$true] %s18_s20 }
   0xf   :  { %p117_p4 = scmp.lt.u32.totalorder %s113_s23, %s227_s1 }
  0x11   :  { %p119_p5 = pnand %p117_p4, %p114_p3 }
  0x13   :  { %122 = shalt.err (!%p119_p5)
}
  0x14   :  { %s123_s0 = scalar_lea.vmem %s19_s20, 384  ;;  %p128_p7 = scmp.lt.s32.totalorder %s19_s20, %s19_s20 }
  0x15   :  { %p124_p6 = scmp.ne.s32.totalorder %s19_s20, %s123_s0  ;;  %p129_p8 = scmp.lt.s32.totalorder %s123_s0, %s123_s0 }
  0x17   :  { %p130_p9 = por %p129_p8, %p128_p7 }
  0x19   :  { %p131_p10 = pnand %p130_p9, %p124_p6 }
  0x1b   :  { %134 = shalt.err (!%p131_p10)
}
  0x1c   :  { %s165_s28 = smov 128   ;;  %s166_s29 = smov 8  }
  0x1d   :  { %24 = dma.hbm_to_vmem [thread:$0]  %s227_s1, 384, %s19_s20, [#allocation5], %s165_s28, %s165_s28, %s166_s29  }
  0x1e   :  { %159 = dma.done.wait [#allocation5], 384  }
  0x1f   :  { %160 = vsyncadd [#allocation5], 4294966912  ;;  %s29_s4 = sld [smem:[#allocation3]]  ;;  %s91_s5 = sld [smem:[#allocation3 + $0x1]] }
  0x20   :  { %s92_s6 = sld [smem:[#allocation3 + $0x2]]  ;;  %s93_s7 = sld [smem:[#allocation3 + $0x3]] }
  0x21   :  { %s94_s8 = sld [smem:[#allocation3 + $0x4]]  ;;  %s95_s9 = sld [smem:[#allocation3 + $0x5]] }
  0x22   :  { %s96_s10 = sld [smem:[#allocation3 + $0x6]]  ;;  %s97_s11 = sld [smem:[#allocation3 + $0x7]] }
  0x23   :  { %s167_s12 = smov [#allocation7]  }
  0x24   :  { %s74_s13 = sshll.u32 %s167_s12, 4  ;;  %s207_s13 = int_to_ptr.vmem [resolvable:$true] %s74_s13 }
  0x25   :  { %s30_s14 = scalar_lea.vmem [#allocation4], %s29_s4  ;;  %s35_s15 = scalar_lea.vmem [#allocation4], %s91_s5 }
  0x26   :  { %v31_v0 = vld [vmem:[%s30_s14] sm:$0x1]  ;;  %s40_s1 = scalar_lea.vmem [#allocation4], %s92_s6  ;;  %s45_s16 = scalar_lea.vmem [#allocation4], %s93_s7 }
  0x27   :  { %v36_v1 = vld [vmem:[%s35_s15] sm:$0x1]  ;;  %32 = vst [vmem:[#allocation7] sm:$0x1] %v31_v0  ;;  %s50_s17 = scalar_lea.vmem [#allocation4], %s94_s8  ;;  %s55_s18 = scalar_lea.vmem [#allocation4], %s95_s9 }
  0x28   :  { %37 = vst [vmem:[#allocation7 + $0x1] sm:$0x1] %v36_v1  ;;  %v41_v2 = vld [vmem:[%s40_s1] sm:$0x1]  ;;  %s60_s19 = scalar_lea.vmem [#allocation4], %s96_s10  ;;  %s65_s20 = scalar_lea.vmem [#allocation4], %s97_s11 }
  0x29   :  { %v46_v3 = vld [vmem:[%s45_s16] sm:$0x1]  ;;  %42 = vst [vmem:[#allocation7 + $0x2] sm:$0x1] %v41_v2  ;;  %s135_s21 = scalar_lea.vmem %s207_s13, 128  ;;  %p140_p12 = scmp.lt.s32.totalorder %s207_s13, %s207_s13 }
  0x2a   :  { %47 = vst [vmem:[#allocation7 + $0x3] sm:$0x1] %v46_v3  ;;  %v51_v4 = vld [vmem:[%s50_s17] sm:$0x1]  ;;  %p136_p11 = scmp.ne.s32.totalorder %s207_s13, %s135_s21  ;;  %p141_p13 = scmp.lt.s32.totalorder %s135_s21, %s135_s21 }
  0x2b   :  { %v56_v5 = vld [vmem:[%s55_s18] sm:$0x1]  ;;  %52 = vst [vmem:[#allocation7 + $0x4] sm:$0x1] %v51_v4 }
  0x2c   :  { %57 = vst [vmem:[#allocation7 + $0x5] sm:$0x1] %v56_v5  ;;  %v61_v6 = vld [vmem:[%s60_s19] sm:$0x1]  ;;  %p142_p0 = por %p141_p13, %p140_p12 }
  0x2d   :  { %v66_v7 = vld [vmem:[%s65_s20] sm:$0x1]  ;;  %62 = vst [vmem:[#allocation7 + $0x6] sm:$0x1] %v61_v6 }
  0x2e   :  { %67 = vst [vmem:[#allocation7 + $0x7] sm:$0x1] %v66_v7  ;;  %p143_p1 = pnand %p142_p0, %p136_p11 }
  0x30   :  { %146 = shalt.err (!%p143_p1)
}
  0x31   :  { %s147_s24 = scalar_lea.hbm %s228_s2, 128 }
  0x32   :  { %p148_p2 = scmp.ne.s32.totalorder %s228_s2, %s147_s24  ;;  %p151_p3 = scmp.lt.u32.totalorder %s147_s24, %s228_s2 }
  0x34   :  { %p153_p4 = pnand %p151_p3, %p148_p2 }
  0x36   :  { %156 = shalt.err (!%p153_p4)
}
  0x37   :  { %77 = dma.vmem_to_hbm [thread:$0]  %s207_s13, 128, %s228_s2, [#allocation6]  }
  0x38   :  { %161 = dma.done.wait [#allocation6], 128  }
  0x39   :  { %162 = vsyncadd [#allocation6], 4294967168 }
  0x3a   :  { %81 = vsyncpa [#allocation5], 1 }
  0x3b   :  { %82 = vsyncpa [#allocation6], 1 }

</bundles_post_ra>
